<compile_context>
chip_gen: v7x
topology: tpu7x:2x2x1
jax: 0.10.0
libtpu: 0.0.40
codegen_flags: <defaults>
</compile_context>

<pallas_src>
import jax
import jax.numpy as jnp
from jax.experimental import pallas as pl
from jax.experimental.pallas import tpu as pltpu

H = 32  # LSTMCell hidden size (fixed to 32 by the module)

# Only these are MXU operands; biases / elementwise math always stay f32.
_MXU_WEIGHTS = ("w1", "w2", "w_ih", "w_hh", "w_head_self", "w_head_nbr")


# ----------------------------- kernel bodies --------------------------------


def _thought_body(obs, hx, cx, w1_ref, b1_ref, w2_ref, b2_ref,
                  wih_ref, whh_ref, bg_ref):
    """x_layer (Linear+ReLU x2) + LSTMCell.  Gate weights are fused to a
    single lane-dense (in, 4H) layout (gate order i|f|g|o), so the whole gate
    pre-activation is two MXU matmuls and sigmoid/tanh run over a full
    128-lane slab.  Returns (h_new, c_new) in f32."""
    x = jnp.dot(obs.astype(w1_ref.dtype), w1_ref[...],
                preferred_element_type=jnp.float32)
    x = jnp.maximum(x + b1_ref[...], 0.0)
    x = jnp.dot(x.astype(w2_ref.dtype), w2_ref[...],
                preferred_element_type=jnp.float32)
    x = jnp.maximum(x + b2_ref[...], 0.0)

    pre = (jnp.dot(x.astype(wih_ref.dtype), wih_ref[...],
                   preferred_element_type=jnp.float32)
           + jnp.dot(hx.astype(whh_ref.dtype), whh_ref[...],
                     preferred_element_type=jnp.float32)
           + bg_ref[...])                                  # (BB, 4H) lane-dense

    sig = jax.nn.sigmoid(pre)        # EUP over the full 128-lane slab
    th = jnp.tanh(pre)
    i = sig[:, 0 * H:1 * H]
    f = sig[:, 1 * H:2 * H]
    g = th[:, 2 * H:3 * H]
    o = sig[:, 3 * H:4 * H]

    c_new = f * cx + i * g
    h_new = o * jnp.tanh(c_new)
    return h_new, c_new


def _head_body(h_self, nbr, ws_ref, wn_ref, bh_ref):
    """pi + critic heads fused into one lane-padded (BB, 128) slab; the concat
    of [hx | neighbours] is folded into split-K matmuls (bit-identical)."""
    out = jnp.dot(h_self.astype(ws_ref.dtype), ws_ref[...],
                  preferred_element_type=jnp.float32)
    out = out + jnp.dot(nbr.astype(wn_ref.dtype), wn_ref[...],
                        preferred_element_type=jnp.float32)
    return out + bh_ref[...]       # bias only in the critic lane (pi: no bias)


# ----------------------------- kernels --------------------------------------


def _get_thought_kernel(obs_ref, hx_ref, cx_ref,
                        w1_ref, b1_ref, w2_ref, b2_ref,
                        wih_ref, whh_ref, bg_ref,
                        hc_ref):
    h_new, c_new = _thought_body(obs_ref[...], hx_ref[...], cx_ref[...],
                                 w1_ref, b1_ref, w2_ref, b2_ref,
                                 wih_ref, whh_ref, bg_ref)
    hc_ref[:, :H] = h_new            # packed [hx_new | cx_new] output block
    hc_ref[:, H:] = c_new


def _head_kernel(hx_ref, nbr_ref, ws_ref, wn_ref, bh_ref, out_ref):
    out_ref[...] = _head_body(hx_ref[...], nbr_ref[...], ws_ref, wn_ref, bh_ref)


def _step_kernel(obs_ref, hx_ref, cx_ref, nbr_ref,
                 w1_ref, b1_ref, w2_ref, b2_ref,
                 wih_ref, whh_ref, bg_ref,
                 ws_ref, wn_ref, bh_ref,
                 hc_ref, head_ref):
    # get_thought + forward fused; hx_new never leaves vregs between stages.
    h_new, c_new = _thought_body(obs_ref[...], hx_ref[...], cx_ref[...],
                                 w1_ref, b1_ref, w2_ref, b2_ref,
                                 wih_ref, whh_ref, bg_ref)
    hc_ref[:, :H] = h_new
    hc_ref[:, H:] = c_new
    head_ref[...] = _head_body(h_new, nbr_ref[...], ws_ref, wn_ref, bh_ref)


# ----------------------------- helpers --------------------------------------


def _round_up(x, m):
    return (x + m - 1) // m * m


def _pad_rows(x, rows):
    if x.shape[0] == rows:
        return x
    return jnp.pad(x, ((0, rows - x.shape[0]),) + ((0, 0),) * (x.ndim - 1))


def _rep_spec(shape):
    # Whole-array block, same block index every grid step -> weights stay
    # resident in VMEM across the (parallel) batch grid.
    return pl.BlockSpec(shape, lambda i, _n=len(shape): (0,) * _n)


def _batch_blocking(batch):
    """Pad only to a multiple of 8 (sublane-dense, never up to a multiple of
    the block size).  Pick a block size that divides the padded batch, capped
    at 512 rows, and that yields >= 2 grid steps when the batch allows it so
    v7x's two TensorCores are both used (free on single-TC v5e/v6e)."""
    bp = _round_up(batch, 8)
    if bp >= 16:
        target = min(512, _round_up(bp // 2, 8))
    else:
        target = bp
    bb = max(8, min(target, bp))
    while bp % bb:
        bb -= 8
    return bp, bb


def _weight_bytes(*ws):
    return sum(int(w.size) * w.dtype.itemsize for w in ws)


def cast_mxu_weights(params, dtype):
    """Cast only the MXU operands (v6e/v7x bf16 path).  Biases and all
    elementwise math stay f32 (v5e's VPU/EUP have no bf16 support)."""
    return {k: (v.astype(dtype) if k in _MXU_WEIGHTS else v)
            for k, v in params.items()}


# ----------------------------- parameters -----------------------------------


def init_params(key, obs_space, n_agents, action_space, dtype=jnp.float32):
    """Weights pre-laid-out once:
       * every matmul weight in (in, out) layout,
       * LSTM gate weights fused to (32, 4H) in torch gate order i|f|g|o and
         b_g = bias_ih + bias_hh fused to (1, 4H),
       * pi and critic heads fused into one (in, 128)-lane-padded slab
         (pi in columns [0, A), critic in column A, critic bias folded into a
         (1, 128) bias row), K-split into hx rows vs neighbour rows so the
         torch.cat becomes a split-K matmul.
    Importing real torch weights: transpose each nn.Linear weight to (in, out),
    transpose lstm.weight_ih / weight_hh to (32, 4H), and sum bias_ih+bias_hh.
    NOTE: torch zero-fills the LSTM biases and the critic layer; small random
    values are used here so the numerical check is non-trivial."""
    ks = jax.random.split(key, 12)
    g_dim = (n_agents - 1) * H
    A = action_space
    L = _round_up(A + 1, 128)            # lane-dense head output width

    def rnd(k, shape, scale=0.1):
        return scale * jax.random.normal(k, shape, jnp.float32)

    w_head_self = jnp.zeros((H, L), jnp.float32)
    w_head_self = w_head_self.at[:, :A].set(rnd(ks[7], (H, A)))
    w_head_self = w_head_self.at[:, A].set(rnd(ks[8], (H,)))
    w_head_nbr = jnp.zeros((g_dim, L), jnp.float32)
    w_head_nbr = w_head_nbr.at[:, :A].set(rnd(ks[9], (g_dim, A)))
    w_head_nbr = w_head_nbr.at[:, A].set(rnd(ks[10], (g_dim,)))
    b_head = jnp.zeros((1, L), jnp.float32)
    b_head = b_head.at[0, A].set(rnd(ks[11], ()))     # critic bias only

    params = {
        "w1": rnd(ks[0], (obs_space, 64)),
        "b1": rnd(ks[1], (1, 64)),
        "w2": rnd(ks[2], (64, H)),
        "b2": rnd(ks[3], (1, H)),
        "w_ih": rnd(ks[4], (H, 4 * H)),        # fused gates i|f|g|o, (in, out)
        "w_hh": rnd(ks[5], (H, 4 * H)),
        "b_g": rnd(ks[6], (1, 4 * H)),          # b_ih + b_hh, fused
        "w_head_self": w_head_self,
        "w_head_nbr": w_head_nbr,
        "b_head": b_head,
        "action_space": A,                      # static python int
    }
    if dtype != jnp.float32:
        params = cast_mxu_weights(params, dtype)
    return params


# ----------------------------- wrappers -------------------------------------


def get_thought(obs, hx, cx, params):
    """obs: (B, obs_space); hx, cx: (B, 32). Returns (hx_new, cx_new)."""
    B, obs_dim = obs.shape
    Bp, BB = _batch_blocking(B)
    obs_p, hx_p, cx_p = _pad_rows(obs, Bp), _pad_rows(hx, Bp), _pad_rows(cx, Bp)

    w1, b1, w2, b2 = params["w1"], params["b1"], params["w2"], params["b2"]
    wih, whh, bg = params["w_ih"], params["w_hh"], params["b_g"]

    flops = 2 * Bp * (obs_dim * 64 + 64 * H + 2 * H * 4 * H) + 20 * Bp * H
    trans = Bp * (2 * 4 * H + H)
    bytes_acc = (4 * (obs_p.size + hx_p.size + cx_p.size + Bp * 2 * H)
                 + _weight_bytes(w1, b1, w2, b2, wih, whh, bg))

    hc = pl.pallas_call(
        _get_thought_kernel,
        out_shape=jax.ShapeDtypeStruct((Bp, 2 * H), jnp.float32),
        grid=(Bp // BB,),
        in_specs=[
            pl.BlockSpec((BB, obs_dim), lambda i: (i, 0)),
            pl.BlockSpec((BB, H), lambda i: (i, 0)),
            pl.BlockSpec((BB, H), lambda i: (i, 0)),
            _rep_spec(w1.shape), _rep_spec(b1.shape),
            _rep_spec(w2.shape), _rep_spec(b2.shape),
            _rep_spec(wih.shape), _rep_spec(whh.shape), _rep_spec(bg.shape),
        ],
        out_specs=pl.BlockSpec((BB, 2 * H), lambda i: (i, 0)),
        compiler_params=pltpu.CompilerParams(dimension_semantics=("parallel",)),
        cost_estimate=pl.CostEstimate(flops=int(flops), transcendentals=int(trans),
                                      bytes_accessed=int(bytes_acc)),
    )(obs_p, hx_p, cx_p, w1, b1, w2, b2, wih, whh, bg)

    return hc[:B, :H], hc[:B, H:]


def acc_forward(hx, neighbours_hx, params):
    """hx: (B, 32); neighbours_hx: (B, n_agents-1, 32). Returns (pi, value).
    Assumes n_agents >= 2 (the module's neighbours_n >= 1 branch)."""
    B = hx.shape[0]
    A = params["action_space"]
    nbr = neighbours_hx.reshape(B, -1)     # matches torch .flatten() per row
    G = nbr.shape[1]
    Bp, BB = _batch_blocking(B)
    hx_p, nbr_p = _pad_rows(hx, Bp), _pad_rows(nbr, Bp)

    ws, wn, bh = params["w_head_self"], params["w_head_nbr"], params["b_head"]
    L = ws.shape[1]

    flops = 2 * Bp * (H + G) * L + Bp * L
    bytes_acc = (4 * (hx_p.size + nbr_p.size + Bp * L)
                 + _weight_bytes(ws, wn, bh))

    head = pl.pallas_call(
        _head_kernel,
        out_shape=jax.ShapeDtypeStruct((Bp, L), jnp.float32),
        grid=(Bp // BB,),
        in_specs=[
            pl.BlockSpec((BB, H), lambda i: (i, 0)),
            pl.BlockSpec((BB, G), lambda i: (i, 0)),
            _rep_spec(ws.shape), _rep_spec(wn.shape), _rep_spec(bh.shape),
        ],
        out_specs=pl.BlockSpec((BB, L), lambda i: (i, 0)),
        compiler_params=pltpu.CompilerParams(dimension_semantics=("parallel",)),
        cost_estimate=pl.CostEstimate(flops=int(flops), transcendentals=0,
                                      bytes_accessed=int(bytes_acc)),
    )(hx_p, nbr_p, ws, wn, bh)

    return head[:B, :A], head[:B, A:A + 1]


def acc_step(obs, hx, cx, neighbours_hx, params):
    """get_thought + forward fused into ONE pallas_call.
    Returns (hx_new, cx_new, pi, value)."""
    B, obs_dim = obs.shape
    A = params["action_space"]
    nbr = neighbours_hx.reshape(B, -1)
    G = nbr.shape[1]
    Bp, BB = _batch_blocking(B)

    obs_p, hx_p = _pad_rows(obs, Bp), _pad_rows(hx, Bp)
    cx_p, nbr_p = _pad_rows(cx, Bp), _pad_rows(nbr, Bp)

    w1, b1, w2, b2 = params["w1"], params["b1"], params["w2"], params["b2"]
    wih, whh, bg = params["w_ih"], params["w_hh"], params["b_g"]
    ws, wn, bh = params["w_head_self"], params["w_head_nbr"], params["b_head"]
    L = ws.shape[1]

    flops = (2 * Bp * (obs_dim * 64 + 64 * H + 2 * H * 4 * H + (H + G) * L)
             + 20 * Bp * H + Bp * L)
    trans = Bp * (2 * 4 * H + H)
    bytes_acc = (4 * (obs_p.size + hx_p.size + cx_p.size + nbr_p.size
                      + Bp * (2 * H + L))
                 + _weight_bytes(w1, b1, w2, b2, wih, whh, bg, ws, wn, bh))

    hc, head = pl.pallas_call(
        _step_kernel,
        out_shape=(jax.ShapeDtypeStruct((Bp, 2 * H), jnp.float32),
                   jax.ShapeDtypeStruct((Bp, L), jnp.float32)),
        grid=(Bp // BB,),
        in_specs=[
            pl.BlockSpec((BB, obs_dim), lambda i: (i, 0)),
            pl.BlockSpec((BB, H), lambda i: (i, 0)),
            pl.BlockSpec((BB, H), lambda i: (i, 0)),
            pl.BlockSpec((BB, G), lambda i: (i, 0)),
            _rep_spec(w1.shape), _rep_spec(b1.shape),
            _rep_spec(w2.shape), _rep_spec(b2.shape),
            _rep_spec(wih.shape), _rep_spec(whh.shape), _rep_spec(bg.shape),
            _rep_spec(ws.shape), _rep_spec(wn.shape), _rep_spec(bh.shape),
        ],
        out_specs=(pl.BlockSpec((BB, 2 * H), lambda i: (i, 0)),
                   pl.BlockSpec((BB, L), lambda i: (i, 0))),
        compiler_params=pltpu.CompilerParams(dimension_semantics=("parallel",)),
        cost_estimate=pl.CostEstimate(flops=int(flops), transcendentals=int(trans),
                                      bytes_accessed=int(bytes_acc)),
    )(obs_p, hx_p, cx_p, nbr_p, w1, b1, w2, b2, wih, whh, bg, ws, wn, bh)

    return hc[:B, :H], hc[:B, H:], head[:B, :A], head[:B, A:A + 1]


# ----------------------------- reference ------------------------------------


def _reference(obs, hx, cx, neighbours_hx, p):
    A = p["action_space"]
    x = jnp.maximum(obs @ p["w1"] + p["b1"], 0.0)
    x = jnp.maximum(x @ p["w2"] + p["b2"], 0.0)
    pre = x @ p["w_ih"] + hx @ p["w_hh"] + p["b_g"]        # (B, 4H), i|f|g|o
    i = jax.nn.sigmoid(pre[:, 0 * H:1 * H])
    f = jax.nn.sigmoid(pre[:, 1 * H:2 * H])
    g = jnp.tanh(pre[:, 2 * H:3 * H])
    o = jax.nn.sigmoid(pre[:, 3 * H:4 * H])
    c_new = f * cx + i * g
    h_new = o * jnp.tanh(c_new)
    xcat = jnp.concatenate([h_new, neighbours_hx.reshape(h_new.shape[0], -1)], 1)
    head = xcat @ jnp.concatenate([p["w_head_self"], p["w_head_nbr"]], 0) + p["b_head"]
    return h_new, c_new, head[:, :A], head[:, A:A + 1]


# ----------------------------- main -----------------------------------------

if __name__ == "__main__":
    key = jax.random.PRNGKey(0)
    B = 8            # batch of agents / env copies (multiple of 8 -> no padding)
    OBS = 16         # obs_space
    N_AGENTS = 3
    A = 5            # action_space

    kp, ko, kh, kc, kn = jax.random.split(key, 5)
    params = init_params(kp, OBS, N_AGENTS, A)                 # f32 weights

    obs = jax.random.normal(ko, (B, OBS), jnp.float32)
    # init_hidden() gives zeros; use non-zero state so the recurrent paths
    # (w_hh / cx) are exercised by the numerical check.
    hx0 = 0.1 * jax.random.normal(kh, (B, H), jnp.float32)
    cx0 = 0.1 * jax.random.normal(kc, (B, H), jnp.float32)
    neighbours_hx = jax.random.normal(kn, (B, N_AGENTS - 1, H), jnp.float32)

    h_ref, c_ref, pi_ref, v_ref = _reference(obs, hx0, cx0, neighbours_hx, params)

    # Two-call path (matches the module's get_thought() / forward() split).
    hx1, cx1 = get_thought(obs, hx0, cx0, params)
    pi, v = acc_forward(hx1, neighbours_hx, params)
    jax.block_until_ready((hx1, cx1, pi, v))

    assert hx1.shape == (B, H) and cx1.shape == (B, H)
    assert pi.shape == (B, A) and v.shape == (B, 1)
    assert jnp.allclose(hx1, h_ref, atol=1e-4, rtol=1e-4)
    assert jnp.allclose(cx1, c_ref, atol=1e-4, rtol=1e-4)
    assert jnp.allclose(pi, pi_ref, atol=1e-4, rtol=1e-4)
    assert jnp.allclose(v, v_ref, atol=1e-4, rtol=1e-4)

    # Fully fused step (single pallas_call; hx never touches HBM in between).
    hx2, cx2, pi2, v2 = jax.block_until_ready(
        acc_step(obs, hx0, cx0, neighbours_hx, params))
    assert jnp.allclose(hx2, h_ref, atol=1e-4, rtol=1e-4)
    assert jnp.allclose(cx2, c_ref, atol=1e-4, rtol=1e-4)
    assert jnp.allclose(pi2, pi_ref, atol=1e-4, rtol=1e-4)
    assert jnp.allclose(v2, v_ref, atol=1e-4, rtol=1e-4)

    # bf16 MXU-operand path (v6e / v7x); f32 accumulation + f32 epilogue.
    params_bf16 = cast_mxu_weights(params, jnp.bfloat16)
    hb, cb, pib, vb = jax.block_until_ready(
        acc_step(obs, hx0, cx0, neighbours_hx, params_bf16))
    assert jnp.allclose(hb, h_ref, atol=1e-1, rtol=1e-1)
    assert jnp.allclose(pib, pi_ref, atol=1e-1, rtol=1e-1)
    assert jnp.allclose(vb, v_ref, atol=1e-1, rtol=1e-1)

    print("KERNEL_OK")
</pallas_src>

<mosaic_0001>
module attributes {stable_mosaic.version = 11 : i64} {
  func.func @_get_thought_kernel(%arg0: i32, %arg1: memref<8x16xf32, #tpu.memory_space<vmem>>, %arg2: memref<8x32xf32, #tpu.memory_space<vmem>>, %arg3: memref<8x32xf32, #tpu.memory_space<vmem>>, %arg4: memref<16x64xf32, #tpu.memory_space<vmem>>, %arg5: memref<1x64xf32, #tpu.memory_space<vmem>>, %arg6: memref<64x32xf32, #tpu.memory_space<vmem>>, %arg7: memref<1x32xf32, #tpu.memory_space<vmem>>, %arg8: memref<32x128xf32, #tpu.memory_space<vmem>>, %arg9: memref<32x128xf32, #tpu.memory_space<vmem>>, %arg10: memref<1x128xf32, #tpu.memory_space<vmem>>, %arg11: memref<8x64xf32, #tpu.memory_space<vmem>>) attributes {dimension_semantics = [#tpu.dimension_semantics<parallel>], iteration_bounds = array<i64: 1>, scalar_prefetch = 0 : i64, scratch_operands = 0 : i64, tpu.core_type = #tpu.core_type<tc>, window_params = [{transform_indices = @transform_0, window_bounds = array<i64: 8, 16>}, {transform_indices = @transform_1, window_bounds = array<i64: 8, 32>}, {transform_indices = @transform_2, window_bounds = array<i64: 8, 32>}, {pipeline_mode = #tpu.pipeline_mode<synchronous>, transform_indices = @transform_3, window_bounds = array<i64: 16, 64>}, {pipeline_mode = #tpu.pipeline_mode<synchronous>, transform_indices = @transform_4, window_bounds = array<i64: 1, 64>}, {pipeline_mode = #tpu.pipeline_mode<synchronous>, transform_indices = @transform_5, window_bounds = array<i64: 64, 32>}, {pipeline_mode = #tpu.pipeline_mode<synchronous>, transform_indices = @transform_6, window_bounds = array<i64: 1, 32>}, {pipeline_mode = #tpu.pipeline_mode<synchronous>, transform_indices = @transform_7, window_bounds = array<i64: 32, 128>}, {pipeline_mode = #tpu.pipeline_mode<synchronous>, transform_indices = @transform_8, window_bounds = array<i64: 32, 128>}, {pipeline_mode = #tpu.pipeline_mode<synchronous>, transform_indices = @transform_9, window_bounds = array<i64: 1, 128>}, {transform_indices = @transform_10, window_bounds = array<i64: 8, 64>}]} {
    %c0 = arith.constant 0 : index
    %c0_0 = arith.constant 0 : index
    %0 = vector.load %arg1[%c0, %c0_0] : memref<8x16xf32, #tpu.memory_space<vmem>>, vector<8x16xf32>
    %c0_1 = arith.constant 0 : index
    %c0_2 = arith.constant 0 : index
    %1 = vector.load %arg2[%c0_1, %c0_2] : memref<8x32xf32, #tpu.memory_space<vmem>>, vector<8x32xf32>
    %c0_3 = arith.constant 0 : index
    %c0_4 = arith.constant 0 : index
    %2 = vector.load %arg3[%c0_3, %c0_4] : memref<8x32xf32, #tpu.memory_space<vmem>>, vector<8x32xf32>
    %c0_5 = arith.constant 0 : index
    %c0_6 = arith.constant 0 : index
    %3 = vector.load %arg4[%c0_5, %c0_6] : memref<16x64xf32, #tpu.memory_space<vmem>>, vector<16x64xf32>
    %cst = arith.constant dense<0.000000e+00> : vector<8x64xf32>
    %4 = tpu.matmul %0, %3, %cst {dimension_numbers = #tpu.dot_dimension_numbers<[1], [0], [0], [1], [0, 0, 1, 1], [], []>} : vector<8x16xf32>, vector<16x64xf32>, vector<8x64xf32> -> vector<8x64xf32>
    %c0_7 = arith.constant 0 : index
    %c0_8 = arith.constant 0 : index
    %5 = vector.load %arg5[%c0_7, %c0_8] : memref<1x64xf32, #tpu.memory_space<vmem>>, vector<1x64xf32>
    %6 = vector.broadcast %5 : vector<1x64xf32> to vector<8x64xf32>
    %7 = arith.addf %4, %6 : vector<8x64xf32>
    %cst_9 = arith.constant 0.000000e+00 : f32
    %8 = vector.broadcast %cst_9 : f32 to vector<8x64xf32>
    %9 = arith.maximumf %7, %8 : vector<8x64xf32>
    %c0_10 = arith.constant 0 : index
    %c0_11 = arith.constant 0 : index
    %10 = vector.load %arg6[%c0_10, %c0_11] : memref<64x32xf32, #tpu.memory_space<vmem>>, vector<64x32xf32>
    %cst_12 = arith.constant dense<0.000000e+00> : vector<8x32xf32>
    %11 = tpu.matmul %9, %10, %cst_12 {dimension_numbers = #tpu.dot_dimension_numbers<[1], [0], [0], [1], [0, 0, 1, 1], [], []>} : vector<8x64xf32>, vector<64x32xf32>, vector<8x32xf32> -> vector<8x32xf32>
    %c0_13 = arith.constant 0 : index
    %c0_14 = arith.constant 0 : index
    %12 = vector.load %arg7[%c0_13, %c0_14] : memref<1x32xf32, #tpu.memory_space<vmem>>, vector<1x32xf32>
    %13 = vector.broadcast %12 : vector<1x32xf32> to vector<8x32xf32>
    %14 = arith.addf %11, %13 : vector<8x32xf32>
    %cst_15 = arith.constant 0.000000e+00 : f32
    %15 = vector.broadcast %cst_15 : f32 to vector<8x32xf32>
    %16 = arith.maximumf %14, %15 : vector<8x32xf32>
    %c0_16 = arith.constant 0 : index
    %c0_17 = arith.constant 0 : index
    %17 = vector.load %arg8[%c0_16, %c0_17] : memref<32x128xf32, #tpu.memory_space<vmem>>, vector<32x128xf32>
    %cst_18 = arith.constant dense<0.000000e+00> : vector<8x128xf32>
    %18 = tpu.matmul %16, %17, %cst_18 {dimension_numbers = #tpu.dot_dimension_numbers<[1], [0], [0], [1], [0, 0, 1, 1], [], []>} : vector<8x32xf32>, vector<32x128xf32>, vector<8x128xf32> -> vector<8x128xf32>
    %c0_19 = arith.constant 0 : index
    %c0_20 = arith.constant 0 : index
    %19 = vector.load %arg9[%c0_19, %c0_20] : memref<32x128xf32, #tpu.memory_space<vmem>>, vector<32x128xf32>
    %cst_21 = arith.constant dense<0.000000e+00> : vector<8x128xf32>
    %20 = tpu.matmul %1, %19, %cst_21 {dimension_numbers = #tpu.dot_dimension_numbers<[1], [0], [0], [1], [0, 0, 1, 1], [], []>} : vector<8x32xf32>, vector<32x128xf32>, vector<8x128xf32> -> vector<8x128xf32>
    %21 = arith.addf %18, %20 : vector<8x128xf32>
    %c0_22 = arith.constant 0 : index
    %c0_23 = arith.constant 0 : index
    %22 = vector.load %arg10[%c0_22, %c0_23] : memref<1x128xf32, #tpu.memory_space<vmem>>, vector<1x128xf32>
    %23 = vector.broadcast %22 : vector<1x128xf32> to vector<8x128xf32>
    %24 = arith.addf %21, %23 : vector<8x128xf32>
    %25 = arith.negf %24 : vector<8x128xf32>
    %26 = math.exp %25 : vector<8x128xf32>
    %cst_24 = arith.constant 1.000000e+00 : f32
    %27 = vector.broadcast %cst_24 : f32 to vector<8x128xf32>
    %28 = arith.addf %27, %26 : vector<8x128xf32>
    %29 = arith.divf %27, %28 : vector<8x128xf32>
    %30 = math.tanh %24 : vector<8x128xf32>
    %31 = vector.extract_strided_slice %29 {offsets = [0, 0], sizes = [8, 32], strides = [1, 1]} : vector<8x128xf32> to vector<8x32xf32>
    %32 = vector.extract_strided_slice %29 {offsets = [0, 32], sizes = [8, 32], strides = [1, 1]} : vector<8x128xf32> to vector<8x32xf32>
    %33 = vector.extract_strided_slice %30 {offsets = [0, 64], sizes = [8, 32], strides = [1, 1]} : vector<8x128xf32> to vector<8x32xf32>
    %34 = vector.extract_strided_slice %29 {offsets = [0, 96], sizes = [8, 32], strides = [1, 1]} : vector<8x128xf32> to vector<8x32xf32>
    %35 = arith.mulf %32, %2 : vector<8x32xf32>
    %36 = arith.mulf %31, %33 : vector<8x32xf32>
    %37 = arith.addf %35, %36 : vector<8x32xf32>
    %38 = math.tanh %37 : vector<8x32xf32>
    %39 = arith.mulf %34, %38 : vector<8x32xf32>
    %c0_25 = arith.constant 0 : index
    %c0_26 = arith.constant 0 : index
    %40 = vector.load %arg11[%c0_25, %c0_26] : memref<8x64xf32, #tpu.memory_space<vmem>>, vector<8x32xf32>
    tpu.vector_store %arg11[%c0_25, %c0_26], %39 {strides = array<i32>} : memref<8x64xf32, #tpu.memory_space<vmem>>, vector<8x32xf32>,
    %c0_27 = arith.constant 0 : index
    %c32 = arith.constant 32 : index
    %41 = vector.load %arg11[%c0_27, %c32] : memref<8x64xf32, #tpu.memory_space<vmem>>, vector<8x32xf32>
    tpu.vector_store %arg11[%c0_27, %c32], %37 {strides = array<i32>} : memref<8x64xf32, #tpu.memory_space<vmem>>, vector<8x32xf32>,
    return
  }
  func.func @transform_0(%arg0: i32) -> (i32, i32) {
    %c0_i32 = arith.constant 0 : i32
    %c0_i32_0 = arith.constant 0 : i32
    return %arg0, %c0_i32 : i32, i32
  }
  func.func @transform_1(%arg0: i32) -> (i32, i32) {
    %c0_i32 = arith.constant 0 : i32
    %c0_i32_0 = arith.constant 0 : i32
    return %arg0, %c0_i32 : i32, i32
  }
  func.func @transform_2(%arg0: i32) -> (i32, i32) {
    %c0_i32 = arith.constant 0 : i32
    %c0_i32_0 = arith.constant 0 : i32
    return %arg0, %c0_i32 : i32, i32
  }
  func.func @transform_3(%arg0: i32) -> (i32, i32) {
    %c0_i32 = arith.constant 0 : i32
    %c0_i32_0 = arith.constant 0 : i32
    %c0_i32_1 = arith.constant 0 : i32
    return %c0_i32, %c0_i32_0 : i32, i32
  }
  func.func @transform_4(%arg0: i32) -> (i32, i32) {
    %c0_i32 = arith.constant 0 : i32
    %c0_i32_0 = arith.constant 0 : i32
    %c0_i32_1 = arith.constant 0 : i32
    return %c0_i32, %c0_i32_0 : i32, i32
  }
  func.func @transform_5(%arg0: i32) -> (i32, i32) {
    %c0_i32 = arith.constant 0 : i32
    %c0_i32_0 = arith.constant 0 : i32
    %c0_i32_1 = arith.constant 0 : i32
    return %c0_i32, %c0_i32_0 : i32, i32
  }
  func.func @transform_6(%arg0: i32) -> (i32, i32) {
    %c0_i32 = arith.constant 0 : i32
    %c0_i32_0 = arith.constant 0 : i32
    %c0_i32_1 = arith.constant 0 : i32
    return %c0_i32, %c0_i32_0 : i32, i32
  }
  func.func @transform_7(%arg0: i32) -> (i32, i32) {
    %c0_i32 = arith.constant 0 : i32
    %c0_i32_0 = arith.constant 0 : i32
    %c0_i32_1 = arith.constant 0 : i32
    return %c0_i32, %c0_i32_0 : i32, i32
  }
  func.func @transform_8(%arg0: i32) -> (i32, i32) {
    %c0_i32 = arith.constant 0 : i32
    %c0_i32_0 = arith.constant 0 : i32
    %c0_i32_1 = arith.constant 0 : i32
    return %c0_i32, %c0_i32_0 : i32, i32
  }
  func.func @transform_9(%arg0: i32) -> (i32, i32) {
    %c0_i32 = arith.constant 0 : i32
    %c0_i32_0 = arith.constant 0 : i32
    %c0_i32_1 = arith.constant 0 : i32
    return %c0_i32, %c0_i32_0 : i32, i32
  }
  func.func @transform_10(%arg0: i32) -> (i32, i32) {
    %c0_i32 = arith.constant 0 : i32
    %c0_i32_0 = arith.constant 0 : i32
    return %arg0, %c0_i32 : i32, i32
  }
}

</mosaic_0001>

<bundles_post_ra>
// kernel: tpu_custom_call.1
= control target key start
LH: loop header
LB: loop body
LE: loop exit
PB: predicated region body
PF: predicated region fallthrough
CT: control target
= control target key end

     0   :  { %15 = vsyncpa [#allocation3], 0  ;;  %s768_s0 = inlined_call_operand.vmem [shape: f32[8,16], index: 0, kind: input, shape index: {}]   ;;  %s769_s1 = inlined_call_operand.vmem [shape: f32[8,32], index: 1, kind: input, shape index: {}]   ;;  %s770_s2 = inlined_call_operand.hbm [shape: f32[8,32], index: 2, kind: input, shape index: {}]   ;;  %s771_s3 = inlined_call_operand.vmem [shape: f32[16,64], index: 3, kind: input, shape index: {}]   ;;  %s772_s4 = inlined_call_operand.vmem [shape: f32[1,64], index: 4, kind: input, shape index: {}]   ;;  %s773_s5 = inlined_call_operand.vmem [shape: f32[64,32], index: 5, kind: input, shape index: {}]   ;;  %s774_s6 = inlined_call_operand.vmem [shape: f32[1,32], index: 6, kind: input, shape index: {}]   ;;  %s775_s7 = inlined_call_operand.vmem [shape: f32[32,128], index: 7, kind: input, shape index: {}]   ;;  %s776_s8 = inlined_call_operand.vmem [shape: f32[32,128], index: 8, kind: input, shape index: {}]   ;;  %s777_s9 = inlined_call_operand.vmem [shape: f32[1,128], index: 9, kind: input, shape index: {}]   ;;  %s778_s10 = inlined_call_operand.hbm [shape: f32[8,64], index: 10, kind: output, shape index: {}]  }
   0x1   :  { %16 = vsyncpa [#allocation4], 0  ;;  %s606_s13 = smov [#allocation2]   ;;  %s558_s17 = scalar_lea.hbm %s770_s2, 128 }
   0x2   :  { %s27_s14 = sshll.u32 %s606_s13, 4  ;;  %p559_p0 = scmp.ne.s32.totalorder %s770_s2, %s558_s17  ;;  %s28_s14 = int_to_ptr.vmem [resolvable:$true] %s27_s14 }
   0x3   :  { %p562_p1 = scmp.lt.u32.totalorder %s558_s17, %s770_s2 }
   0x5   :  { %p564_p2 = pnand %p562_p1, %p559_p0 }
   0x7   :  { %567 = shalt.err (!%p564_p2)
}
   0x8   :  { %s568_s22 = scalar_lea.vmem %s28_s14, 128  ;;  %p573_p4 = scmp.lt.s32.totalorder %s28_s14, %s28_s14 }
   0x9   :  { %p569_p3 = scmp.ne.s32.totalorder %s28_s14, %s568_s22  ;;  %p574_p5 = scmp.lt.s32.totalorder %s568_s22, %s568_s22 }
   0xb   :  { %p575_p6 = por %p574_p5, %p573_p4 }
   0xd   :  { %p576_p7 = pnand %p575_p6, %p569_p3 }
   0xf   :  { %579 = shalt.err (!%p576_p7)
}
  0x10   :  { %30 = dma.hbm_to_vmem [thread:$0]  %s770_s2, 128, %s28_s14, [#allocation3]  }
  0x11   :  { %602 = dma.done.wait [#allocation3], 128  }
  0x12   :  { %603 = vsyncadd [#allocation3], 4294967168  ;;  %v607_v0 = vmov 0.0|0.0   ;;  %vm608_vm0 = vmmov 0   ;;  %v609_v1 = vmov 0.0   ;;  %v51_v2 = vld [vmem:[%s771_s3] sm:$0xff] }
  0x13   :  { %516 = vmatprep.subr.bf16.mxu0 %v607_v0  ;;  %472 = vmatprep.mubr.msk.f32.mxu0 %vm608_vm0, %v609_v1  ;;  %v52_v3 = vld [vmem:[%s771_s3 + $0x8] sm:$0xff]  ;;  %v135_v5 = vld [vmem:[%s773_s5] sm:$0xff]  ;;  %v137_v7 = vld [vmem:[%s773_s5 + $0x10] sm:$0xff]  ;;  %vm60_vm1 = vcmask 130048   ;;  %vm233_vm2 = vcmask 261120   ;;  %vm150_vm3 = vcmask 523264  }
  0x14   :  { %519 = vmatprep.subr.bf16.mxu1 %v607_v0  ;;  %491 = vmatprep.mubr.msk.f32.mxu1 %vm608_vm0, %v609_v1  ;;  %v517_v4 = vpack.c.bf16 %v52_v3, %v51_v2  ;;  %v136_v6 = vld [vmem:[%s773_s5 + $0x8] sm:$0xff]  ;;  %v138_v9 = vld [vmem:[%s773_s5 + $0x18] sm:$0xff]  ;;  %v48_v10 = vld [vmem:[%s768_s0] sm:$0xff]  ;;  %vm421_vm4 = vcmask 523520  }
  0x15   :  { %v520_v8 = vpack.c.bf16 %v136_v6, %v135_v5  ;;  %v523_v11 = vpack.c.bf16 %v138_v9, %v137_v7  ;;  %v139_v12 = vld [vmem:[%s773_s5 + $0x20] sm:$0xff]  ;;  %v140_v13 = vld [vmem:[%s773_s5 + $0x28] sm:$0xff]  ;;  %v141_v15 = vld [vmem:[%s773_s5 + $0x30] sm:$0xff] }
  0x16   :  { %518 = vmatpush3.bf16.msra.mxu0 %v517_v4  ;;  %v526_v14 = vpack.c.bf16 %v140_v13, %v139_v12  ;;  %v142_v16 = vld [vmem:[%s773_s5 + $0x38] sm:$0xff]  ;;  %v229_v18 = vld [vmem:[%s776_s8] sm:$0xff]  ;;  %v230_v19 = vld [vmem:[%s776_s8 + $0x8] sm:$0xff] }
  0x17   :  { %521 = vmatpush3.bf16.msra.mxu1 %v520_v8  ;;  %531 = vmatprep.subr.bf16.mxu0 %v607_v0  ;;  %v529_v17 = vpack.c.bf16 %v142_v16, %v141_v15  ;;  %v231_v20 = vld [vmem:[%s776_s8 + $0x10] sm:$0xff]  ;;  %v532_v21 = vpack.c.bf16 %v230_v19, %v229_v18  ;;  %v232_v22 = vld [vmem:[%s776_s8 + $0x18] sm:$0xff]  ;;  %v225_v24 = vld [vmem:[%s775_s7] sm:$0xff] }
  0x18   :  { %522 = vmatprep.subr.bf16.mxu1 %v607_v0  ;;  %v535_v23 = vpack.c.bf16 %v232_v22, %v231_v20  ;;  %v226_v25 = vld [vmem:[%s775_s7 + $0x8] sm:$0xff]  ;;  %v49_v26 = vld [vmem:[%s769_s1] sm:$0xff]  ;;  %v227_v33 = vld [vmem:[%s775_s7 + $0x10] sm:$0xff] }
  0x19   :  { %473 = vmatmul.mubr.msk.f32.vlgmr.msra.gmra.mrb[0].mxu0 %vm60_vm1, %v48_v10  ;;  %v538_v27 = vpack.c.bf16 %v226_v25, %v225_v24  ;;  %v438_v28 = vld [vmem:[%s772_s4] ss:$0 sm:$0xff]  ;;  %v228_v34 = vld [vmem:[%s775_s7 + $0x18] sm:$0xff]  ;;  %s610_s7 = smov 64  }
  0x1a   :  { %502 = vmatprep.mubr.msk.f32.mxu0 %vm608_vm0, %v609_v1  ;;  %533 = vmatpush3.bf16.msra.mxu0 %v532_v21  ;;  %v541_v35 = vpack.c.bf16 %v228_v34, %v227_v33  ;;  %v440_v38 = vld [vmem:[%s774_s6] ss:$0 sm:$0xff]  ;;  %s611_s6 = smov 32  }
  0x1b   :  { %524 = vmatpush3.bf16.msra.mxu1 %v523_v11  ;;  %534 = vmatprep.subr.bf16.mxu0 %v607_v0  ;;  %v444_v44 = vld [vmem:[%s777_s9] ss:$0 sm:$0xff]  ;;  %s612_s9 = smov [#allocation5]  }
  0x1c   :  { %525 = vmatprep.subr.bf16.mxu1 %v607_v0  ;;  %v50_v49 = vld [vmem:[#allocation2] sm:$0xff]  ;;  %s429_s21 = sshll.u32 %s612_s9, 4  ;;  %s430_s21 = int_to_ptr.vmem [resolvable:$true] %s429_s21 }
  0x1d   :  { %s580_s22 = scalar_lea.vmem %s430_s21, 128  ;;  %p585_p9 = scmp.lt.s32.totalorder %s430_s21, %s430_s21 }
  0x1e   :  { %536 = vmatpush3.bf16.msra.mxu0 %v535_v23  ;;  %p581_p8 = scmp.ne.s32.totalorder %s430_s21, %s580_s22  ;;  %p586_p10 = scmp.lt.s32.totalorder %s580_s22, %s580_s22 }
  0x1f   :  { %527 = vmatpush3.bf16.msra.mxu1 %v526_v14  ;;  %537 = vmatprep.subr.bf16.mxu0 %v607_v0 }
  0x20   :  { %528 = vmatprep.subr.bf16.mxu1 %v607_v0  ;;  %p587_p11 = por %p586_p10, %p585_p9 }
  0x21   :  { %503 = vmatmul.mubr.msk.f32.vlgmr.msra.gmra.mrb[2].mxu0 %vm233_vm2, %v49_v26 }
  0x22   :  { %539 = vmatpush3.bf16.msra.mxu0 %v538_v27  ;;  %513 = vmatprep.mubr.msk.f32.mxu0 %vm608_vm0, %v609_v1  ;;  %p588_p12 = pnand %p587_p11, %p581_p8 }
  0x23   :  { %530 = vmatpush3.bf16.msra.mxu1 %v529_v17  ;;  %540 = vmatprep.subr.bf16.mxu0 %v607_v0 }
  0x26   :  { %542 = vmatpush3.bf16.msra.mxu0 %v541_v35 }
  0xec   :  { %v130_v29 = vpop.f32.mrb[0].mxu0 }
  0xed   :  { %v131_v30 = vadd.f32 %v438_v28, %v130_v29  ;;  %v474_v31 = vpop.f32.mrb[1].mxu0 }
  0xef   :  { %v134_v32 = vmax.f32 %v131_v30, 0.0 }
  0xf1   :  { %492 = vmatmul.mubr.msk.f32.vlgmr.msra.gmra.mrb[0].mxu1 %vm150_vm3, %v134_v32 }
  0xf4   :  { %v303_v36 = vpop.f32.mrb[2].mxu0 }
  0xf5   :  { %v504_v37 = vpop.f32.mrb[3].mxu0 }
 0x1c4   :  { %v220_v39 = vpop.f32.mrb[0].mxu1 }
 0x1c5   :  { %v221_v40 = vadd.f32 %v440_v38, %v220_v39  ;;  %v493_v41 = vpop.f32.mrb[1].mxu1 }
 0x1c7   :  { %v224_v42 = vmax.f32 %v221_v40, 0.0 }
 0x1c9   :  { %514 = vmatmul.mubr.msk.f32.vlgmr.msra.gmra.mrb[4].mxu0 %vm233_vm2, %v224_v42 }
 0x29c   :  { %v376_v43 = vpop.f32.mrb[4].mxu0 }
 0x29d   :  { %v377_v45 = vadd.f32 %v376_v43, %v303_v36  ;;  %v515_v46 = vpop.f32.mrb[5].mxu0 }
 0x29f   :  { %v387_v47 = vadd.f32 %v444_v44, %v377_v45 }
 0x2a1   :  { %550 = vtanh.f32 %v387_v47  ;;  %v445_v50 = vmul.f32 -1.442695, %v387_v47 }
 0x2a3   :  { %552 = vpow2.f32 %v445_v50 }
 0x2ab   :  { %v551_v48 = vpop.eup %550 }
 0x2ac   :  { %401 = vrot.lane.b32.xlu0 %v551_v48, %s610_s7 }
 0x2ad   :  { %v553_v51 = vpop.eup %552 }
 0x2ae   :  { %v391_v52 = vadd.f32 1.0, %v553_v51 }
 0x2b0   :  { %396 = vrot.lane.b32.xlu0 %v50_v49, %s611_s6  ;;  %554 = vrcp.f32 %v391_v52 }
 0x2ba   :  { %v555_v53 = vpop.eup %554 }
 0x31e   :  { %v402_v54 = vpop.permute.xlu0 %401 }
 0x31f   :  { %v404_v55 = vmul.f32 %v555_v53, %v402_v54 }
 0x321   :  { %406 = vrot.lane.b32.xlu1 %v404_v55, %s611_s6 }
 0x322   :  { %v397_v56 = vpop.permute.xlu0 %396 }
 0x323   :  { %v399_v57 = vmul.f32 %v555_v53, %v397_v56 }
 0x393   :  { %v407_v58 = vpop.permute.xlu1 %406 }
 0x394   :  { %v409_v59 = vadd.f32 %v407_v58, %v399_v57 }
 0x396   :  { %556 = vtanh.f32 %v409_v59 }
 0x3a0   :  { %v557_v60 = vpop.eup %556 }
 0x3a1   :  { %412 = vrot.lane.b32.xlu1 %v557_v60, %s610_s7 }
 0x413   :  { %v413_v61 = vpop.permute.xlu1 %412 }
 0x414   :  { %v415_v62 = vmul.f32 %v555_v53, %v413_v61 }
 0x416   :  { %417 = vrot.lane.b32.xlu0 %v415_v62, %s611_s6 }
 0x488   :  { %v418_v63 = vpop.permute.xlu0 %417 }
 0x489   :  { %420 = vst.msk [vmem:[#allocation5] sm:$0xff] %vm233_vm2, %v418_v63 }
 0x48a   :  { %422 = vst.msk [vmem:[#allocation5] sm:$0xff] %vm421_vm4, %v409_v59 }
 0x48b   :  { %591 = shalt.err (!%p588_p12)
}
 0x48c   :  { %s592_s25 = scalar_lea.hbm %s778_s10, 128 }
 0x48d   :  { %p593_p13 = scmp.ne.s32.totalorder %s778_s10, %s592_s25  ;;  %p596_p0 = scmp.lt.u32.totalorder %s592_s25, %s778_s10 }
 0x48f   :  { %p598_p1 = pnand %p596_p0, %p593_p13 }
 0x491   :  { %601 = shalt.err (!%p598_p1)
}
 0x492   :  { %432 = dma.vmem_to_hbm [thread:$0]  %s430_s21, 128, %s778_s10, [#allocation4]  }
 0x493   :  { %604 = dma.done.wait [#allocation4], 128  }
 0x494   :  { %605 = vsyncadd [#allocation4], 4294967168 }
 0x495   :  { %436 = vsyncpa [#allocation3], 1 }
 0x496   :  { %437 = vsyncpa [#allocation4], 1 }

</bundles_post_ra>
